<compile_context>
chip_gen: v7x
topology: tpu7x:2x2x1
jax: 0.10.0
libtpu: 0.0.40
codegen_flags: <defaults>
</compile_context>

<pallas_src>
import functools

import jax
import jax.numpy as jnp
import numpy as np
from jax.experimental import pallas as pl
from jax.experimental.pallas import tpu as pltpu

HEADS = 2
INNER_DIM = 256  # hard-coded in the PyTorch module


def attention_kernel(x_ref, wqkv_ref, wout_ref, bout_ref, out_ref, attn_ref):
    """Single-shot kernel: the whole (tiny) problem lives in VMEM.

    x_ref    : (b*n, dim)      bf16  (reshaped + cast in the wrapper)
    wqkv_ref : (dim, 3*inner)  bf16  (torch weight transposed, pre-cast)
    wout_ref : (inner, dim)    bf16
    bout_ref : (1, dim)        f32
    out_ref  : (b*n, dim)      f32   (wrapper reshapes to (b, n, dim))
    attn_ref : (b*h, n, n)     f32   (wrapper reshapes to (b, h, n, n))
    """
    bn, dim = x_ref.shape
    inner = wout_ref.shape[0]
    bh, n, _ = attn_ref.shape
    b = bn // n
    h = bh // b
    d = inner // h
    scale = float(dim) ** (-0.5)

    # ---- fused QKV projection: ONE (b*n, dim) @ (dim, 3*inner) MXU matmul ----
    qkv = jnp.dot(x_ref[...], wqkv_ref[...],
                  preferred_element_type=jnp.float32)            # (b*n, 3*inner) f32

    # ---- single batched QK^T over all (batch, head) pairs ----
    # Each (n, d=128) q/k tile is a vreg-aligned static slice of qkv; one
    # concatenate stacks them, replacing the per-head Python loop.
    qh = jnp.concatenate(
        [qkv[bi * n:(bi + 1) * n, hi * d:(hi + 1) * d]
         for bi in range(b) for hi in range(h)], axis=0).reshape(b * h, n, d)
    kh = jnp.concatenate(
        [qkv[bi * n:(bi + 1) * n, inner + hi * d:inner + (hi + 1) * d]
         for bi in range(b) for hi in range(h)], axis=0).reshape(b * h, n, d)

    dots = jnp.einsum('xid,xjd->xij', qh, kh,
                      preferred_element_type=jnp.float32) * scale   # (b*h, n, n)

    # f32 softmax; exact division because attn is a user-visible output.
    m = jnp.max(dots, axis=-1, keepdims=True)
    e = jnp.exp(dots - m)
    s = jnp.sum(e, axis=-1, keepdims=True)
    a = e / s                                                     # (b*h, n, n)
    attn_ref[...] = a                                             # one full-slab store

    # Reference semantics ('qwij,bhjd->bhid' with mask=None): the softmaxed
    # attention is SUMMED over batch and head before being applied.
    attn_sum = jnp.sum(a, axis=0)                                 # (n, n)

    # ---- value path, reassociated:  out[b] = attn_sum @ (V[b] @ Wout) + bias ----
    # Big K=inner contraction done once, stacked over batch; remaining K=n
    # matmuls are tiny.  No broadcast_to / broadcasting einsum.
    v = qkv[:, 2 * inner:].astype(jnp.bfloat16)                   # (b*n, inner)
    p = jnp.dot(v, wout_ref[...],
                preferred_element_type=jnp.float32)               # (b*n, dim) f32
    o = jnp.concatenate(
        [jnp.dot(attn_sum, p[bi * n:(bi + 1) * n, :],
                 preferred_element_type=jnp.float32)
         for bi in range(b)], axis=0)                             # (b*n, dim)
    out_ref[...] = o + bout_ref[...]                              # single store, bias once


def prepare_params(w_qkv, w_out, b_out):
    """One-time parameter prep OUTSIDE jit: transpose to (in, out) layout and
    cast the MXU weight operands to bf16 (accumulation stays f32 in-kernel)."""
    w_qkv_t = jnp.asarray(w_qkv, jnp.float32).T.astype(jnp.bfloat16)   # (dim, 3*inner)
    w_out_t = jnp.asarray(w_out, jnp.float32).T.astype(jnp.bfloat16)   # (inner, dim)
    b_out_2d = jnp.asarray(b_out, jnp.float32).reshape(1, -1)          # (1, dim)
    return w_qkv_t, w_out_t, b_out_2d


@functools.partial(jax.jit, static_argnames=("heads",))
def attention_forward(x, w_qkv_t, w_out_t, b_out_2d, heads=HEADS):
    """x: (b, n, dim) f32. Weights already prepared by prepare_params()."""
    b, n, dim = x.shape
    inner = w_out_t.shape[0]
    d = inner // heads

    # Layout plumbing in the wrapper (free): flatten batch*seq and cast to bf16
    # so the kernel's first matmul operand is already MXU-ready.
    x2 = x.reshape(b * n, dim).astype(jnp.bfloat16)

    cost = pl.CostEstimate(
        flops=(2 * b * n * dim * 3 * inner        # QKV projection
               + 2 * b * heads * n * n * d        # q @ k^T
               + 2 * b * n * inner * dim          # V @ Wout
               + 2 * b * n * n * dim),            # attn_sum applied
        transcendentals=b * heads * n * n,        # exp
        bytes_accessed=(b * n * dim * 2           # x (bf16)
                        + w_qkv_t.size * 2 + w_out_t.size * 2
                        + b_out_2d.size * 4
                        + b * n * dim * 4         # out
                        + b * heads * n * n * 4), # attn
    )

    vmem = pl.BlockSpec(memory_space=pltpu.MemorySpace.VMEM)
    out_flat, attn_flat = pl.pallas_call(
        attention_kernel,
        out_shape=(jax.ShapeDtypeStruct((b * n, dim), jnp.float32),
                   jax.ShapeDtypeStruct((b * heads, n, n), jnp.float32)),
        in_specs=[vmem, vmem, vmem, vmem],
        out_specs=(vmem, vmem),
        cost_estimate=cost,
    )(x2, w_qkv_t, w_out_t, b_out_2d)

    out = out_flat.reshape(b, n, dim)
    attn = attn_flat.reshape(b, heads, n, n)
    # dots[0][0].softmax(-1) is identical to attn[0, 0] when mask is None.
    return out, attn, attn[0, 0]


def attention_reference(x, w_qkv, w_out, b_out, heads=HEADS):
    """Pure-JAX f32 transcription of the PyTorch forward (mask=None)."""
    b, n, dim = x.shape
    inner = w_out.shape[1]
    d = inner // heads
    scale = float(dim) ** (-0.5)

    qkv = jnp.einsum('bnc,kc->bnk', x, w_qkv)                    # (b, n, 3*inner)
    q, k, v = jnp.split(qkv, 3, axis=-1)
    to_heads = lambda t: t.reshape(b, n, heads, d).transpose(0, 2, 1, 3)
    q, k, v = map(to_heads, (q, k, v))                           # (b, h, n, d)

    dots = jnp.einsum('bhid,bhjd->bhij', q, k) * scale
    dots_softmax = jax.nn.softmax(dots[0, 0], axis=-1)
    attn = jax.nn.softmax(dots, axis=-1)
    out = jnp.einsum('qwij,bhjd->bhid', attn, v)                 # sums over q, w
    out = out.transpose(0, 2, 1, 3).reshape(b, n, inner)
    out = jnp.einsum('bni,oi->bno', out, w_out) + b_out
    return out, attn, dots_softmax


if __name__ == "__main__":
    b, n, dim = 2, 8, 32

    key = jax.random.PRNGKey(0)
    k_x, k_qkv, k_out, k_b = jax.random.split(key, 4)
    x = jax.random.normal(k_x, (b, n, dim), dtype=jnp.float32)
    # torch-convention weights, deterministic init
    w_qkv = jax.random.normal(k_qkv, (3 * INNER_DIM, dim), jnp.float32) * (dim ** -0.5)
    w_out = jax.random.normal(k_out, (dim, INNER_DIM), jnp.float32) * (INNER_DIM ** -0.5)
    b_out = jax.random.normal(k_b, (dim,), jnp.float32) * 0.01

    w_qkv_t, w_out_t, b_out_2d = prepare_params(w_qkv, w_out, b_out)
    out, attn, ds = attention_forward(x, w_qkv_t, w_out_t, b_out_2d)
    jax.block_until_ready((out, attn, ds))

    out_r, attn_r, ds_r = attention_reference(x, w_qkv, w_out, b_out)
    # attn/dots_softmax: logits carry bf16 (x, w_qkv) error vs the f32 reference.
    np.testing.assert_allclose(np.asarray(attn), np.asarray(attn_r), rtol=2e-2, atol=2e-2)
    np.testing.assert_allclose(np.asarray(ds), np.asarray(ds_r), rtol=2e-2, atol=2e-2)
    # out compared vs a pure-f32 reference; kernel uses bf16 MXU operands with
    # f32 accumulation, so allow bf16-level slack here.
    np.testing.assert_allclose(np.asarray(out), np.asarray(out_r), rtol=5e-2, atol=5e-2)

    print("KERNEL_OK")
</pallas_src>

<mosaic_0001>
module attributes {stable_mosaic.version = 11 : i64} {
  func.func @attention_kernel(%arg0: memref<16x32xbf16, #tpu.memory_space<vmem>>, %arg1: memref<32x768xbf16, #tpu.memory_space<vmem>>, %arg2: memref<256x32xbf16, #tpu.memory_space<vmem>>, %arg3: memref<1x32xf32, #tpu.memory_space<vmem>>, %arg4: memref<16x32xf32, #tpu.memory_space<vmem>>, %arg5: memref<4x8x8xf32, #tpu.memory_space<vmem>>) attributes {dimension_semantics = [], scalar_prefetch = 0 : i64, scratch_operands = 0 : i64, tpu.core_type = #tpu.core_type<tc>} {
    %c0 = arith.constant 0 : index
    %c0_0 = arith.constant 0 : index
    %0 = vector.load %arg0[%c0, %c0_0] : memref<16x32xbf16, #tpu.memory_space<vmem>>, vector<16x32xbf16>
    %c0_1 = arith.constant 0 : index
    %c0_2 = arith.constant 0 : index
    %1 = vector.load %arg1[%c0_1, %c0_2] : memref<32x768xbf16, #tpu.memory_space<vmem>>, vector<32x768xbf16>
    %cst = arith.constant dense<0.000000e+00> : vector<16x768xf32>
    %2 = tpu.matmul %0, %1, %cst {dimension_numbers = #tpu.dot_dimension_numbers<[1], [0], [0], [1], [0, 0, 1, 1], [], []>} : vector<16x32xbf16>, vector<32x768xbf16>, vector<16x768xf32> -> vector<16x768xf32>
    %3 = vector.extract_strided_slice %2 {offsets = [0, 0], sizes = [8, 128], strides = [1, 1]} : vector<16x768xf32> to vector<8x128xf32>
    %4 = vector.extract_strided_slice %2 {offsets = [0, 128], sizes = [8, 128], strides = [1, 1]} : vector<16x768xf32> to vector<8x128xf32>
    %5 = vector.extract_strided_slice %2 {offsets = [8, 0], sizes = [8, 128], strides = [1, 1]} : vector<16x768xf32> to vector<8x128xf32>
    %6 = vector.extract_strided_slice %2 {offsets = [8, 128], sizes = [8, 128], strides = [1, 1]} : vector<16x768xf32> to vector<8x128xf32>
    %7 = tpu.concatenate %3, %4, %5, %6 in 0 : vector<8x128xf32>, vector<8x128xf32>, vector<8x128xf32>, vector<8x128xf32> -> vector<32x128xf32>
    %8 = vector.shape_cast %7 : vector<32x128xf32> to vector<4x8x128xf32>
    %9 = vector.extract_strided_slice %2 {offsets = [0, 256], sizes = [8, 128], strides = [1, 1]} : vector<16x768xf32> to vector<8x128xf32>
    %10 = vector.extract_strided_slice %2 {offsets = [0, 384], sizes = [8, 128], strides = [1, 1]} : vector<16x768xf32> to vector<8x128xf32>
    %11 = vector.extract_strided_slice %2 {offsets = [8, 256], sizes = [8, 128], strides = [1, 1]} : vector<16x768xf32> to vector<8x128xf32>
    %12 = vector.extract_strided_slice %2 {offsets = [8, 384], sizes = [8, 128], strides = [1, 1]} : vector<16x768xf32> to vector<8x128xf32>
    %13 = tpu.concatenate %9, %10, %11, %12 in 0 : vector<8x128xf32>, vector<8x128xf32>, vector<8x128xf32>, vector<8x128xf32> -> vector<32x128xf32>
    %14 = vector.shape_cast %13 : vector<32x128xf32> to vector<4x8x128xf32>
    "tpu.trace_start"() <{level = 10 : i32, message = "xid,xjd->xij"}> : () -> ()
    %cst_3 = arith.constant dense<0.000000e+00> : vector<4x8x8xf32>
    %15 = tpu.matmul %8, %14, %cst_3 {dimension_numbers = #tpu.dot_dimension_numbers<[2], [2], [1], [1], [0, 0, 0, 1, 1, 1], [0], [0]>} : vector<4x8x128xf32>, vector<4x8x128xf32>, vector<4x8x8xf32> -> vector<4x8x8xf32>
    "tpu.trace_stop"() : () -> ()
    %cst_4 = arith.constant 0.176776692 : f32
    %16 = vector.broadcast %cst_4 : f32 to vector<4x8x8xf32>
    %17 = arith.mulf %15, %16 : vector<4x8x8xf32>
    %cst_5 = arith.constant dense<0xFF800000> : vector<4x8xf32>
    %18 = vector.multi_reduction <maximumf>, %17, %cst_5 [2] : vector<4x8x8xf32> to vector<4x8xf32>
    %19 = vector.shape_cast %18 : vector<4x8xf32> to vector<4x8x1xf32>
    %20 = vector.broadcast %19 : vector<4x8x1xf32> to vector<4x8x8xf32>
    %21 = arith.subf %17, %20 : vector<4x8x8xf32>
    %22 = math.exp %21 : vector<4x8x8xf32>
    %cst_6 = arith.constant dense<0.000000e+00> : vector<4x8xf32>
    %23 = vector.multi_reduction <add>, %22, %cst_6 [2] : vector<4x8x8xf32> to vector<4x8xf32>
    %24 = vector.shape_cast %23 : vector<4x8xf32> to vector<4x8x1xf32>
    %25 = vector.broadcast %24 : vector<4x8x1xf32> to vector<4x8x8xf32>
    %26 = arith.divf %22, %25 : vector<4x8x8xf32>
    %c0_7 = arith.constant 0 : index
    %c0_8 = arith.constant 0 : index
    %c0_9 = arith.constant 0 : index
    %27 = vector.load %arg5[%c0_7, %c0_8, %c0_9] : memref<4x8x8xf32, #tpu.memory_space<vmem>>, vector<4x8x8xf32>
    tpu.vector_store %arg5[%c0_7, %c0_8, %c0_9], %26 {strides = array<i32>} : memref<4x8x8xf32, #tpu.memory_space<vmem>>, vector<4x8x8xf32>,
    %cst_10 = arith.constant dense<0.000000e+00> : vector<8x8xf32>
    %28 = vector.multi_reduction <add>, %26, %cst_10 [0] : vector<4x8x8xf32> to vector<8x8xf32>
    %29 = vector.extract_strided_slice %2 {offsets = [0, 512], sizes = [16, 256], strides = [1, 1]} : vector<16x768xf32> to vector<16x256xf32>
    %30 = arith.truncf %29 : vector<16x256xf32> to vector<16x256xbf16>
    %c0_11 = arith.constant 0 : index
    %c0_12 = arith.constant 0 : index
    %31 = vector.load %arg2[%c0_11, %c0_12] : memref<256x32xbf16, #tpu.memory_space<vmem>>, vector<256x32xbf16>
    %cst_13 = arith.constant dense<0.000000e+00> : vector<16x32xf32>
    %32 = tpu.matmul %30, %31, %cst_13 {dimension_numbers = #tpu.dot_dimension_numbers<[1], [0], [0], [1], [0, 0, 1, 1], [], []>} : vector<16x256xbf16>, vector<256x32xbf16>, vector<16x32xf32> -> vector<16x32xf32>
    %33 = vector.extract_strided_slice %32 {offsets = [0, 0], sizes = [8, 32], strides = [1, 1]} : vector<16x32xf32> to vector<8x32xf32>
    %cst_14 = arith.constant dense<0.000000e+00> : vector<8x32xf32>
    %34 = tpu.matmul %28, %33, %cst_14 {dimension_numbers = #tpu.dot_dimension_numbers<[1], [0], [0], [1], [0, 0, 1, 1], [], []>} : vector<8x8xf32>, vector<8x32xf32>, vector<8x32xf32> -> vector<8x32xf32>
    %35 = vector.extract_strided_slice %32 {offsets = [8, 0], sizes = [8, 32], strides = [1, 1]} : vector<16x32xf32> to vector<8x32xf32>
    %cst_15 = arith.constant dense<0.000000e+00> : vector<8x32xf32>
    %36 = tpu.matmul %28, %35, %cst_15 {dimension_numbers = #tpu.dot_dimension_numbers<[1], [0], [0], [1], [0, 0, 1, 1], [], []>} : vector<8x8xf32>, vector<8x32xf32>, vector<8x32xf32> -> vector<8x32xf32>
    %37 = tpu.concatenate %34, %36 in 0 : vector<8x32xf32>, vector<8x32xf32> -> vector<16x32xf32>
    %c0_16 = arith.constant 0 : index
    %c0_17 = arith.constant 0 : index
    %38 = vector.load %arg3[%c0_16, %c0_17] : memref<1x32xf32, #tpu.memory_space<vmem>>, vector<1x32xf32>
    %39 = vector.broadcast %38 : vector<1x32xf32> to vector<16x32xf32>
    %40 = arith.addf %37, %39 : vector<16x32xf32>
    %c0_18 = arith.constant 0 : index
    %c0_19 = arith.constant 0 : index
    %41 = vector.load %arg4[%c0_18, %c0_19] : memref<16x32xf32, #tpu.memory_space<vmem>>, vector<16x32xf32>
    tpu.vector_store %arg4[%c0_18, %c0_19], %40 {strides = array<i32>} : memref<16x32xf32, #tpu.memory_space<vmem>>, vector<16x32xf32>,
    return
  }
}

</mosaic_0001>

<bundles_post_ra>
// kernel: attention_forward.1
= control target key start
LH: loop header
LB: loop body
LE: loop exit
PB: predicated region body
PF: predicated region fallthrough
CT: control target
= control target key end

     0   :  { %v1098_v2 = vmov 0   ;;  %vm100_vm0 = vcmask 261120   ;;  %s1289_s0 = inlined_call_operand.vmem [shape: bf16[16,32], index: 0, kind: input, shape index: {}]   ;;  %s1290_s1 = inlined_call_operand.vmem [shape: bf16[32,768], index: 1, kind: input, shape index: {}]   ;;  %s1291_s2 = inlined_call_operand.vmem [shape: bf16[256,32], index: 2, kind: input, shape index: {}]   ;;  %s1292_s3 = inlined_call_operand.vmem [shape: f32[1,32], index: 3, kind: input, shape index: {}]   ;;  %s1293_s4 = inlined_call_operand.hbm [shape: f32[16,32], index: 4, kind: output, shape index: {0}]   ;;  %s1294_s5 = inlined_call_operand.vmem [shape: f32[4,8,8], index: 5, kind: output, shape index: {1}]  }
   0x1   :  { %v1023_v0 = vld [vmem:[%s1290_s1 + $0x4] ss:$24 sps:$4 sm:$0xff]   ;;  %v1025_v1 = vld [vmem:[%s1290_s1] ss:$24 sps:$4 sm:$0xff]   ;;  %136 = vmatprep.mubr.bf16.mxu1 %v1098_v2  ;;  %222 = vmatprep.mubr.bf16.mxu0 %v1098_v2  ;;  %v1026_v3 = vld [vmem:[%s1290_s1 + $0x34] ss:$24 sps:$4 sm:$0xff]  }
   0x2   :  { %104 = vmatprep.subr.bf16.mxu1 %v1023_v0  ;;  %v1028_v4 = vld [vmem:[%s1290_s1 + $0x30] ss:$24 sps:$4 sm:$0xff]   ;;  %v1029_v5 = vld [vmem:[%s1289_s0] sm:$0xff]   ;;  %v1035_v8 = vld [vmem:[%s1290_s1 + $0x3c] ss:$24 sps:$4 sm:$0xff]  }
   0x3   :  { %105 = vmatpush1.bf16.msra.mxu1 %v1025_v1  ;;  %v1032_v6 = vld [vmem:[%s1290_s1 + $0xc] ss:$24 sps:$4 sm:$0xff]   ;;  %v1030_v7 = vld [vmem:[%s1290_s1 + $0x8] ss:$24 sps:$4 sm:$0xff]   ;;  %v1033_v9 = vld [vmem:[%s1290_s1 + $0x38] ss:$24 sps:$4 sm:$0xff]  }
   0x4   :  { %106 = vmatprep.subr.bf16.mxu1 %v1026_v3 }
   0x7   :  { %107 = vmatpush1.bf16.msra.mxu1 %v1028_v4 }
   0x8   :  { %147 = vmatprep.subr.bf16.mxu1 %v1032_v6 }
   0xa   :  { %931 = vmatmul.mubr.msk.bf16.vlgmr.msra.gmra.mrb[0].mxu1 %vm100_vm0, %v1029_v5 }
   0xb   :  { %148 = vmatpush1.bf16.msra.mxu1 %v1030_v7  ;;  %179 = vmatprep.mubr.bf16.mxu1 %v1098_v2 }
   0xc   :  { %149 = vmatprep.subr.bf16.mxu1 %v1035_v8 }
   0xf   :  { %150 = vmatpush1.bf16.msra.mxu1 %v1033_v9 }
  0x12   :  { %932 = vmatmul.mubr.msk.bf16.vlgmr.msra.gmra.mrb[4].mxu1 %vm100_vm0, %v1029_v5 }
  0x13   :  { %11 = vsyncpa [#allocation3], 0  ;;  %v1099_v10 = vmov 0.0   ;;  %vm1100_vm1 = vmmov 0   ;;  %v1036_v11 = vld [vmem:[%s1290_s1 + $0x14] ss:$24 sps:$4 sm:$0xff]  }
  0x14   :  { %987 = vmatprep.subr.mxu1 %v1099_v10  ;;  %989 = vmatprep.mubr.msk.f32.mxu1 %vm1100_vm1, %v1099_v10  ;;  %v1038_v12 = vld [vmem:[%s1290_s1 + $0x10] ss:$24 sps:$4 sm:$0xff]   ;;  %v1039_v13 = vld [vmem:[%s1290_s1 + $0x44] ss:$24 sps:$4 sm:$0xff]   ;;  %v1041_v14 = vld [vmem:[%s1290_s1 + $0x40] ss:$24 sps:$4 sm:$0xff]  }
  0x15   :  { %190 = vmatprep.subr.bf16.mxu0 %v1036_v11  ;;  %v1042_v23 = vld [vmem:[%s1291_s2 + $0x40] sm:$0xff]   ;;  %v1044_v25 = vld [vmem:[%s1291_s2 + $0x48] sm:$0xff]   ;;  %v1046_v27 = vld [vmem:[%s1291_s2 + $0x50] sm:$0xff]   ;;  %vm517_vm2 = vcmask 64512   ;;  %s1101_s6 = smov [#allocation2]  }
  0x16   :  { %191 = vmatpush1.bf16.msra.mxu0 %v1038_v12  ;;  %v1043_v24 = vld [vmem:[%s1291_s2] sm:$0xff]   ;;  %v1045_v26 = vld [vmem:[%s1291_s2 + $0x8] sm:$0xff]   ;;  %v1047_v29 = vld [vmem:[%s1291_s2 + $0x10] sm:$0xff]  }
  0x17   :  { %192 = vmatprep.subr.bf16.mxu0 %v1039_v13  ;;  %v1048_v31 = vld [vmem:[%s1291_s2 + $0x58] sm:$0xff]   ;;  %v1050_v37 = vld [vmem:[%s1291_s2 + $0x60] sm:$0xff]   ;;  %v1052_v39 = vld [vmem:[%s1291_s2 + $0x68] sm:$0xff]  }
  0x18   :  { %v1049_v36 = vld [vmem:[%s1291_s2 + $0x18] sm:$0xff]   ;;  %v1051_v38 = vld [vmem:[%s1291_s2 + $0x20] sm:$0xff]   ;;  %v1053_v40 = vld [vmem:[%s1291_s2 + $0x28] sm:$0xff]  }
  0x19   :  { %v1054_v41 = vld [vmem:[%s1291_s2 + $0x70] sm:$0xff]   ;;  %v1056_v43 = vld [vmem:[%s1291_s2 + $0x78] sm:$0xff]  }
  0x1a   :  { %193 = vmatpush1.bf16.msra.mxu0 %v1041_v14  ;;  %v1055_v42 = vld [vmem:[%s1291_s2 + $0x30] sm:$0xff]   ;;  %v1057_v44 = vld [vmem:[%s1291_s2 + $0x38] sm:$0xff]  }
  0x1b   :  { %961 = vmatprep.subr.bf16.mxu0 %v1042_v23 }
  0x1d   :  { %933 = vmatmul.mubr.msk.bf16.vlgmr.msra.gmra.mrb[0].mxu0 %vm100_vm0, %v1029_v5 }
  0x1e   :  { %962 = vmatpush3.bf16.msra.mxu0 %v1043_v24 }
  0x1f   :  { %963 = vmatprep.subr.bf16.mxu0 %v1044_v25 }
  0x22   :  { %964 = vmatpush3.bf16.msra.mxu0 %v1045_v26 }
  0x23   :  { %965 = vmatprep.subr.bf16.mxu0 %v1046_v27 }
  0x26   :  { %966 = vmatpush3.bf16.msra.mxu0 %v1047_v29 }
  0x27   :  { %967 = vmatprep.subr.bf16.mxu0 %v1048_v31 }
  0x2a   :  { %968 = vmatpush3.bf16.msra.mxu0 %v1049_v36 }
  0x2b   :  { %969 = vmatprep.subr.bf16.mxu0 %v1050_v37 }
  0x2e   :  { %970 = vmatpush3.bf16.msra.mxu0 %v1051_v38 }
  0x2f   :  { %971 = vmatprep.subr.bf16.mxu0 %v1052_v39 }
  0x32   :  { %972 = vmatpush3.bf16.msra.mxu0 %v1053_v40 }
  0x33   :  { %973 = vmatprep.subr.bf16.mxu0 %v1054_v41 }
  0x36   :  { %974 = vmatpush3.bf16.msra.mxu0 %v1055_v42 }
  0x37   :  { %975 = vmatprep.subr.bf16.mxu0 %v1056_v43  ;;  %v952_v43 = vld [vmem:[%s1292_s3] ss:$0 sm:$0xff] }
  0x3a   :  { %976 = vmatpush3.bf16.msra.mxu0 %v1057_v44 }
  0xdd   :  { %v138_v15 = vpop.f32.mrb[0].mxu1 }
  0xde   :  { %v140_v16 = vpop.f32.mrb[1].mxu1 }
  0xdf   :  { %v142_v17 = vpop.f32.mrb[2].mxu1 }
  0xe0   :  { %v144_v18 = vpop.f32.mrb[3].mxu1 }
  0xe5   :  { %v181_v19 = vpop.f32.mrb[4].mxu1 }
  0xe6   :  { %v183_v20 = vpop.f32.mrb[5].mxu1  ;;  %988 = vmatpush3.xpose.msra.mxu1 %v181_v19 }
  0xe7   :  { %v185_v21 = vpop.f32.mrb[6].mxu1  ;;  %992 = vmatprep.subr.mxu1 %v1099_v10 }
  0xe8   :  { %v187_v22 = vpop.f32.mrb[7].mxu1 }
  0xe9   :  { %990 = vmatmul.mubr.f32.vlgmr.msra.gmra.mrb[8].mxu1 %v138_v15 }
  0xea   :  { %993 = vmatpush3.xpose.msra.mxu1 %v183_v20  ;;  %994 = vmatprep.mubr.msk.f32.mxu1 %vm1100_vm1, %v1099_v10 }
  0xeb   :  { %997 = vmatprep.subr.mxu1 %v1099_v10 }
  0xed   :  { %995 = vmatmul.mubr.f32.vlgmr.msra.gmra.mrb[10].mxu1 %v140_v16 }
  0xee   :  { %998 = vmatpush3.xpose.msra.mxu1 %v185_v21  ;;  %999 = vmatprep.mubr.msk.f32.mxu1 %vm1100_vm1, %v1099_v10 }
  0xef   :  { %1002 = vmatprep.subr.mxu1 %v1099_v10 }
  0xf0   :  { %v224_v28 = vpop.f32.mrb[0].mxu0 }
  0xf1   :  { %1000 = vmatmul.mubr.f32.vlgmr.msra.gmra.mrb[12].mxu1 %v142_v17  ;;  %v226_v30 = vpop.f32.mrb[1].mxu0 }
  0xf2   :  { %1003 = vmatpush3.xpose.msra.mxu1 %v187_v22  ;;  %1004 = vmatprep.mubr.msk.f32.mxu1 %vm1100_vm1, %v1099_v10  ;;  %v228_v32 = vpop.f32.mrb[2].mxu0 }
  0xf3   :  { %1007 = vmatprep.subr.mxu1 %v1099_v10  ;;  %v573_v33 = vpack.c.bf16 %v228_v32, %v224_v28  ;;  %v230_v34 = vpop.f32.mrb[3].mxu0 }
  0xf4   :  { %v574_v35 = vpack.c.bf16 %v230_v34, %v226_v30 }
  0xf5   :  { %1005 = vmatmul.mubr.f32.vlgmr.msra.gmra.mrb[14].mxu1 %v144_v18 }
  0xf6   :  { %1009 = vmatprep.mubr.msk.f32.mxu1 %vm1100_vm1, %v1099_v10  ;;  %735 = vmatprep.mubr.bf16.mxu0 %v574_v35 }
  0xf7   :  { %736 = vmatmul.mubr.bf16.vlgmr.msra.gmra.mrb[4].mxu0 %v573_v33 }
 0x1bc   :  { %v299_v45 = vpop.f32.mrb[8].mxu1 }
 0x1bd   :  { %v513_v46 = vmul.f32 0.17677669, %v299_v45  ;;  %v991_v47 = vpop.f32.mrb[9].mxu1 }
 0x1bf   :  { %v518_v48 = vsel %vm517_vm2, %v513_v46, -inf }
 0x1c0   :  { %519 = vmax.xlane.f32.xlu0 %v518_v48  ;;  %v369_v49 = vpop.f32.mrb[10].mxu1 }
 0x1c1   :  { %v514_v50 = vmul.f32 0.17677669, %v369_v49  ;;  %v996_v51 = vpop.f32.mrb[11].mxu1 }
 0x1c3   :  { %v521_v52 = vsel %vm517_vm2, %v514_v50, -inf }
 0x1c4   :  { %522 = vmax.xlane.f32.xlu0 %v521_v52  ;;  %v439_v53 = vpop.f32.mrb[12].mxu1 }
 0x1c5   :  { %v515_v54 = vmul.f32 0.17677669, %v439_v53  ;;  %v1001_v55 = vpop.f32.mrb[13].mxu1 }
 0x1c7   :  { %v524_v56 = vsel %vm517_vm2, %v515_v54, -inf }
 0x1c8   :  { %525 = vmax.xlane.f32.xlu1 %v524_v56  ;;  %v509_v57 = vpop.f32.mrb[14].mxu1 }
 0x1c9   :  { %v516_v58 = vmul.f32 0.17677669, %v509_v57  ;;  %v1006_v59 = vpop.f32.mrb[15].mxu1 }
 0x1ca   :  { %v977_v18 = vpop.f32.mrb[4].mxu0 }
 0x1cb   :  { %v527_v60 = vsel %vm517_vm2, %v516_v58, -inf  ;;  %v978_v19 = vpop.f32.mrb[5].mxu0 }
 0x1cc   :  { %528 = vmax.xlane.f32.xlu1 %v527_v60  ;;  %v980_v20 = vpop.f32.mrb[6].mxu0  ;;  %v979_v22 = vadd.f32 %v978_v19, %v977_v18 }
 0x1cd   :  { %v981_v21 = vpop.f32.mrb[7].mxu0 }
 0x1ce   :  { %v982_v23 = vadd.f32 %v981_v21, %v980_v20  ;;  %1008 = vmatpush3.msra.mxu1 %v979_v22 }
 0x1cf   :  { %1012 = vmatprep.subr.mxu1 %v1099_v10 }
 0x24d   :  { %v520_v61 = vpop.xlane.xlu0 %519 }
 0x24e   :  { %v530_v62 = vsub.f32 %v513_v46, %v520_v61 }
 0x250   :  { %v534_v63 = vmul.f32 1.442695, %v530_v62 }
 0x251   :  { %v523_v0 = vpop.xlane.xlu0 %522 }
 0x252   :  { %1058 = vpow2.f32 %v534_v63  ;;  %v531_v1 = vsub.f32 %v514_v50, %v523_v0 }
 0x254   :  { %v536_v2 = vmul.f32 1.442695, %v531_v1 }
 0x255   :  { %v526_v3 = vpop.xlane.xlu1 %525 }
 0x256   :  { %1060 = vpow2.f32 %v536_v2  ;;  %v532_v4 = vsub.f32 %v515_v54, %v526_v3 }
 0x258   :  { %v538_v5 = vmul.f32 1.442695, %v532_v4 }
 0x259   :  { %v529_v6 = vpop.xlane.xlu1 %528 }
 0x25a   :  { %1062 = vpow2.f32 %v538_v5  ;;  %v533_v7 = vsub.f32 %v516_v58, %v529_v6 }
 0x25c   :  { %v1059_v8 = vpop.eup %1058  ;;  %v540_v9 = vmul.f32 1.442695, %v533_v7 }
 0x25d   :  { %v542_v11 = vsel %vm517_vm2, %v1059_v8, 0.0 }
 0x25e   :  { %1064 = vpow2.f32 %v540_v9  ;;  %543 = vadd.xlane.f32.xlu0 %v542_v11 }
 0x260   :  { %v1061_v12 = vpop.eup %1060 }
 0x261   :  { %v545_v13 = vsel %vm517_vm2, %v1061_v12, 0.0 }
 0x262   :  { %546 = vadd.xlane.f32.xlu1 %v545_v13 }
 0x264   :  { %v1063_v14 = vpop.eup %1062 }
 0x265   :  { %v548_v15 = vsel %vm517_vm2, %v1063_v14, 0.0 }
 0x266   :  { %549 = vadd.xlane.f32.xlu0 %v548_v15 }
 0x268   :  { %v1065_v16 = vpop.eup %1064 }
 0x269   :  { %v551_v17 = vsel %vm517_vm2, %v1065_v16, 0.0 }
 0x26a   :  { %552 = vadd.xlane.f32.xlu1 %v551_v17 }
 0x2eb   :  { %v544_v24 = vpop.xlane.xlu0 %543 }
 0x2ec   :  { %1066 = vrcp.f32 %v544_v24 }
 0x2ef   :  { %v547_v25 = vpop.xlane.xlu1 %546 }
 0x2f0   :  { %1068 = vrcp.f32 %v547_v25 }
 0x2f3   :  { %v550_v26 = vpop.xlane.xlu0 %549 }
 0x2f4   :  { %1070 = vrcp.f32 %v550_v26 }
 0x2f6   :  { %v1067_v27 = vpop.eup %1066 }
 0x2f7   :  { %v555_v28 = vmul.f32 %v1067_v27, %v1059_v8  ;;  %v553_v29 = vpop.xlane.xlu1 %552 }
 0x2f8   :  { %1072 = vrcp.f32 %v553_v29 }
 0x2f9   :  { %562 = vst.msk [vmem:[%s1294_s5] sm:$0xff] %vm517_vm2, %v555_v28  ;;  %v566_v35 = vsel %vm517_vm2, %v555_v28, 0.0 }
 0x2fa   :  { %v1069_v30 = vpop.eup %1068 }
 0x2fb   :  { %v557_v31 = vmul.f32 %v1069_v30, %v1061_v12 }
 0x2fd   :  { %563 = vst.msk [vmem:[%s1294_s5 + $0x8] sm:$0xff] %vm517_vm2, %v557_v31  ;;  %v567_v33 = vsel %vm517_vm2, %v557_v31, 0.0 }
 0x2fe   :  { %v1071_v32 = vpop.eup %1070  ;;  %v568_v38 = vadd.f32 %v567_v33, %v566_v35 }
 0x2ff   :  { %v559_v34 = vmul.f32 %v1071_v32, %v1063_v14 }
 0x301   :  { %564 = vst.msk [vmem:[%s1294_s5 + $0x10] sm:$0xff] %vm517_vm2, %v559_v34  ;;  %v569_v36 = vsel %vm517_vm2, %v559_v34, 0.0 }
 0x302   :  { %v1073_v37 = vpop.eup %1072  ;;  %v570_v40 = vadd.f32 %v569_v36, %v568_v38 }
 0x303   :  { %v561_v39 = vmul.f32 %v1073_v37, %v1065_v16 }
 0x305   :  { %565 = vst.msk [vmem:[%s1294_s5 + $0x18] sm:$0xff] %vm517_vm2, %v561_v39  ;;  %v571_v41 = vsel %vm517_vm2, %v561_v39, 0.0  ;;  %s903_s5 = sshll.u32 %s1101_s6, 4  ;;  %s904_s5 = int_to_ptr.vmem [resolvable:$true] %s903_s5 }
 0x306   :  { %v572_v42 = vadd.f32 %v571_v41, %v570_v40  ;;  %s1074_s7 = scalar_lea.vmem %s904_s5, 256  ;;  %p1079_p1 = scmp.lt.s32.totalorder %s904_s5, %s904_s5 }
 0x307   :  { %p1075_p0 = scmp.ne.s32.totalorder %s904_s5, %s1074_s7  ;;  %p1080_p2 = scmp.lt.s32.totalorder %s1074_s7, %s1074_s7 }
 0x308   :  { %1010 = vmatmul.mubr.msk.f32.vlgmr.msra.gmra.mrb[16].mxu1 %vm517_vm2, %v572_v42 }
 0x309   :  { %1013 = vmatpush3.msra.mxu1 %v982_v23  ;;  %1014 = vmatprep.mubr.msk.f32.mxu1 %vm1100_vm1, %v1099_v10  ;;  %p1081_p3 = por %p1080_p2, %p1079_p1 }
 0x30b   :  { %p1082_p4 = pnand %p1081_p3, %p1075_p0 }
 0x30c   :  { %1015 = vmatmul.mubr.msk.f32.vlgmr.msra.gmra.mrb[18].mxu1 %vm517_vm2, %v572_v42 }
 0x3db   :  { %v813_v44 = vpop.f32.mrb[16].mxu1 }
 0x3dc   :  { %v894_v45 = vadd.f32 %v952_v43, %v813_v44  ;;  %v1011_v46 = vpop.f32.mrb[17].mxu1 }
 0x3de   :  { %896 = vst.msk [vmem:[#allocation2] sm:$0xff] %vm100_vm0, %v894_v45 }
 0x3df   :  { %v883_v47 = vpop.f32.mrb[18].mxu1 }
 0x3e0   :  { %v895_v48 = vadd.f32 %v952_v43, %v883_v47  ;;  %v1016_v49 = vpop.f32.mrb[19].mxu1 }
 0x3e2   :  { %897 = vst.msk [vmem:[#allocation2 + $0x8] sm:$0xff] %vm100_vm0, %v895_v48 }
 0x3e3   :  { %1085 = shalt.err (!%p1082_p4)
}
 0x3e4   :  { %s1086_s9 = scalar_lea.hbm %s1293_s4, 256 }
 0x3e5   :  { %p1087_p5 = scmp.ne.s32.totalorder %s1293_s4, %s1086_s9  ;;  %p1090_p6 = scmp.lt.u32.totalorder %s1086_s9, %s1293_s4 }
 0x3e7   :  { %p1092_p7 = pnand %p1090_p6, %p1087_p5 }
 0x3e9   :  { %1095 = shalt.err (!%p1092_p7)
}
 0x3ea   :  { %s1102_s13 = smov 128   ;;  %s1103_s14 = smov 8  }
 0x3eb   :  { %909 = dma.vmem_to_hbm [thread:$0]  %s904_s5, 256, %s1293_s4, [#allocation3], %s1102_s13, %s1102_s13, %s1103_s14  }
 0x3ec   :  { %1096 = dma.done.wait [#allocation3], 256  }
 0x3ed   :  { %1097 = vsyncadd [#allocation3], 4294967040 }
 0x3ee   :  { %917 = vsyncpa [#allocation3], 1 }

</bundles_post_ra>
